<compile_context>
chip_gen: v7x
topology: tpu7x:2x2x1
jax: 0.10.0
libtpu: 0.0.40
codegen_flags: <defaults>
</compile_context>

<pallas_src>
import jax
import jax.numpy as jnp
from jax.experimental import pallas as pl
from jax.experimental.pallas import tpu as pltpu

IN_FEATURES = 28 * 28        # 784
NUM_CLASSES = 10
LANE = 128                   # lane-dense padded width for hidden & class dims
TILE_B_MAX = 2048            # rows per grid step (roofline plateaus ~512-2048)


def _round_up(n, m):
    return (n + m - 1) // m * m


def _choose_batch_tiling(batch):
    """Pad batch only to a multiple of 8, then pick the grid step count so:
       (a) each tile fits comfortably in VMEM (<= TILE_B_MAX rows),
       (b) there are >= 2 (even) steps when possible so the "parallel" axis
           can be sharded across both v7x TensorCores,
       (c) extra padding is bounded by 8*(steps-1) rows (<0.5% for large B).
    """
    b_pad = _round_up(max(batch, 1), 8)
    steps = max(pl.cdiv(b_pad, TILE_B_MAX), 2 if b_pad >= 16 else 1)
    if steps > 1 and steps % 2:
        steps += 1                      # even step count for 2-TC sharding
    tile_b = _round_up(pl.cdiv(b_pad, steps), 8)
    return steps * tile_b, tile_b, steps


def simple_nn_kernel(x_ref, w1_ref, b1_ref, w2_ref, b2_ref, out_ref):
    # x tile arrives as f32 straight from the caller's array; cast to bf16
    # here (free VPU filler under a DMA-bound regime) so both matmuls run on
    # the MXU with f32 accumulation.
    x = x_ref[...].astype(jnp.bfloat16)

    # fc1 + bias + ReLU (elementwise tail in f32).
    h = jnp.dot(x, w1_ref[...], preferred_element_type=jnp.float32)
    h = jnp.maximum(h + b1_ref[...], 0.0)          # b1 is (1, Hpad) -> broadcast

    # fc2 + bias (hidden cast back to bf16 for the MXU).
    logits = jnp.dot(h.astype(jnp.bfloat16), w2_ref[...],
                     preferred_element_type=jnp.float32)
    logits = logits + b2_ref[...]                  # (1, 128) -> broadcast

    # Mask padded class lanes with the finite f32 min (not -inf) so they never
    # perturb the max / logsumexp and the raw padded buffer stays inf/NaN-free.
    lane = jax.lax.broadcasted_iota(jnp.int32, logits.shape, dimension=1)
    logits = jnp.where(lane < NUM_CLASSES, logits, jnp.finfo(jnp.float32).min)

    # Numerically-stable LogSoftmax over the class axis.
    m = jnp.max(logits, axis=1, keepdims=True)
    shifted = logits - m
    lse = jnp.log(jnp.sum(jnp.exp(shifted), axis=1, keepdims=True))
    out_ref[...] = (shifted - lse).astype(out_ref.dtype)


def simple_nn_forward(x, w1, b1, w2, b2, *, out_dtype=jnp.float32):
    """x: (B, 1, 28, 28) or (B, 784). w1: (784, H), b1: (H,), w2: (H, 10),
    b2: (10,) -- weights stored as (in, out), transposed vs. PyTorch.
    Returns (B, 10) log-probabilities in `out_dtype`."""
    B = x.shape[0]
    H = w1.shape[1]
    b_pad, tile_b, steps = _choose_batch_tiling(B)
    h_pad = _round_up(max(H, LANE), LANE)   # 128; do NOT pad to 256 (HBM-bound)

    # x stays f32 and is only padded along the batch dim when needed
    # (no padded-K / bf16 x materialization in the wrapper).
    x2d = x.reshape(B, IN_FEATURES).astype(jnp.float32)
    if b_pad != B:
        x2d = jnp.pad(x2d, ((0, b_pad - B), (0, 0)))

    # Weights/biases are tiny (<~0.3 MiB); pad them to lane-dense shapes.
    # Zero padding is exact for the dots / bias adds.
    w1_p = jnp.zeros((IN_FEATURES, h_pad), jnp.bfloat16)
    w1_p = w1_p.at[:, :H].set(w1.astype(jnp.bfloat16))
    b1_p = jnp.zeros((1, h_pad), jnp.float32).at[0, :H].set(b1.astype(jnp.float32))
    w2_p = jnp.zeros((h_pad, LANE), jnp.bfloat16)
    w2_p = w2_p.at[:H, :NUM_CLASSES].set(w2.astype(jnp.bfloat16))
    b2_p = jnp.zeros((1, LANE), jnp.float32)
    b2_p = b2_p.at[0, :NUM_CLASSES].set(b2.astype(jnp.float32))

    flops = 2 * b_pad * IN_FEATURES * h_pad + 2 * b_pad * h_pad * LANE
    bytes_accessed = (b_pad * IN_FEATURES * 4                 # x (f32 read)
                      + w1_p.size * 2 + w2_p.size * 2         # bf16 weights
                      + (b1_p.size + b2_p.size) * 4           # f32 biases
                      + b_pad * LANE * jnp.dtype(out_dtype).itemsize)

    out = pl.pallas_call(
        simple_nn_kernel,
        out_shape=jax.ShapeDtypeStruct((b_pad, LANE), out_dtype),
        grid_spec=pl.GridSpec(
            grid=(steps,),
            in_specs=[
                # x tile: (tile_b, 784); 784 == full array dim so the
                # non-128-multiple lane width is legal (Mosaic pads internally).
                pl.BlockSpec((tile_b, IN_FEATURES), lambda i: (i, 0)),
                # Weights/biases stay VMEM-resident across the batch grid.
                pl.BlockSpec((IN_FEATURES, h_pad), lambda i: (0, 0)),   # w1
                pl.BlockSpec((1, h_pad), lambda i: (0, 0)),             # b1
                pl.BlockSpec((h_pad, LANE), lambda i: (0, 0)),          # w2
                pl.BlockSpec((1, LANE), lambda i: (0, 0)),              # b2
            ],
            out_specs=pl.BlockSpec((tile_b, LANE), lambda i: (i, 0)),
        ),
        compiler_params=pltpu.CompilerParams(
            dimension_semantics=("parallel",),      # shard batch over v7x TCs
            vmem_limit_bytes=32 * 1024 * 1024,      # ~20 MiB used at tile=2048
        ),
        cost_estimate=pl.CostEstimate(
            flops=flops,
            transcendentals=b_pad * LANE,           # exp in log-softmax
            bytes_accessed=bytes_accessed,
        ),
    )(x2d, w1_p, b1_p, w2_p, b2_p)

    return out[:B, :NUM_CLASSES]


def init_params(key, hidden_size):
    """Deterministic parameter init (PyTorch-Linear-style uniform bounds)."""
    k1, k2, k3, k4 = jax.random.split(key, 4)
    bound1 = 1.0 / jnp.sqrt(IN_FEATURES)
    bound2 = 1.0 / jnp.sqrt(hidden_size)
    # Stored as (in_features, out_features) = transpose of PyTorch layout.
    w1 = jax.random.uniform(k1, (IN_FEATURES, hidden_size), jnp.float32,
                            -bound1, bound1)
    b1 = jax.random.uniform(k2, (hidden_size,), jnp.float32, -bound1, bound1)
    w2 = jax.random.uniform(k3, (hidden_size, NUM_CLASSES), jnp.float32,
                            -bound2, bound2)
    b2 = jax.random.uniform(k4, (NUM_CLASSES,), jnp.float32, -bound2, bound2)
    return w1, b1, w2, b2


if __name__ == "__main__":
    hidden_size = 32
    batch = 8

    key = jax.random.PRNGKey(0)
    kx, kp = jax.random.split(key)
    x = jax.random.normal(kx, (batch, 1, 28, 28), jnp.float32)
    w1, b1, w2, b2 = init_params(kp, hidden_size)

    out = simple_nn_forward(x, w1, b1, w2, b2)
    jax.block_until_ready(out)

    # Reference with matching matmul precision (bf16 operands, f32 accumulate).
    xr = x.reshape(batch, -1)
    h = jnp.maximum(
        jnp.dot(xr.astype(jnp.bfloat16), w1.astype(jnp.bfloat16),
                preferred_element_type=jnp.float32) + b1, 0.0)
    logits = jnp.dot(h.astype(jnp.bfloat16), w2.astype(jnp.bfloat16),
                     preferred_element_type=jnp.float32) + b2
    ref = jax.nn.log_softmax(logits, axis=1)

    assert out.shape == (batch, NUM_CLASSES)
    max_err = float(jnp.max(jnp.abs(out - ref)))
    assert jnp.allclose(out, ref, atol=2e-3, rtol=2e-3), (
        "max abs err = %f" % max_err)

    print("KERNEL_OK")
</pallas_src>

<mosaic_0001>
module attributes {stable_mosaic.version = 11 : i64} {
  func.func @simple_nn_kernel(%arg0: i32, %arg1: memref<8x784xf32, #tpu.memory_space<vmem>>, %arg2: memref<784x128xbf16, #tpu.memory_space<vmem>>, %arg3: memref<1x128xf32, #tpu.memory_space<vmem>>, %arg4: memref<128x128xbf16, #tpu.memory_space<vmem>>, %arg5: memref<1x128xf32, #tpu.memory_space<vmem>>, %arg6: memref<8x128xf32, #tpu.memory_space<vmem>>) attributes {dimension_semantics = [#tpu.dimension_semantics<parallel>], iteration_bounds = array<i64: 1>, scalar_prefetch = 0 : i64, scratch_operands = 0 : i64, tpu.core_type = #tpu.core_type<tc>, window_params = [{transform_indices = @transform_0, window_bounds = array<i64: 8, 784>}, {pipeline_mode = #tpu.pipeline_mode<synchronous>, transform_indices = @transform_1, window_bounds = array<i64: 784, 128>}, {pipeline_mode = #tpu.pipeline_mode<synchronous>, transform_indices = @transform_2, window_bounds = array<i64: 1, 128>}, {pipeline_mode = #tpu.pipeline_mode<synchronous>, transform_indices = @transform_3, window_bounds = array<i64: 128, 128>}, {pipeline_mode = #tpu.pipeline_mode<synchronous>, transform_indices = @transform_4, window_bounds = array<i64: 1, 128>}, {transform_indices = @transform_5, window_bounds = array<i64: 8, 128>}]} {
    %c0 = arith.constant 0 : index
    %c0_0 = arith.constant 0 : index
    %0 = vector.load %arg1[%c0, %c0_0] : memref<8x784xf32, #tpu.memory_space<vmem>>, vector<8x784xf32>
    %1 = arith.truncf %0 : vector<8x784xf32> to vector<8x784xbf16>
    %c0_1 = arith.constant 0 : index
    %c0_2 = arith.constant 0 : index
    %2 = vector.load %arg2[%c0_1, %c0_2] : memref<784x128xbf16, #tpu.memory_space<vmem>>, vector<784x128xbf16>
    %cst = arith.constant dense<0.000000e+00> : vector<8x128xf32>
    %3 = tpu.matmul %1, %2, %cst {dimension_numbers = #tpu.dot_dimension_numbers<[1], [0], [0], [1], [0, 0, 1, 1], [], []>} : vector<8x784xbf16>, vector<784x128xbf16>, vector<8x128xf32> -> vector<8x128xf32>
    %c0_3 = arith.constant 0 : index
    %c0_4 = arith.constant 0 : index
    %4 = vector.load %arg3[%c0_3, %c0_4] : memref<1x128xf32, #tpu.memory_space<vmem>>, vector<1x128xf32>
    %5 = vector.broadcast %4 : vector<1x128xf32> to vector<8x128xf32>
    %6 = arith.addf %3, %5 : vector<8x128xf32>
    %cst_5 = arith.constant 0.000000e+00 : f32
    %7 = vector.broadcast %cst_5 : f32 to vector<8x128xf32>
    %8 = arith.maximumf %6, %7 : vector<8x128xf32>
    %9 = arith.truncf %8 : vector<8x128xf32> to vector<8x128xbf16>
    %c0_6 = arith.constant 0 : index
    %c0_7 = arith.constant 0 : index
    %10 = vector.load %arg4[%c0_6, %c0_7] : memref<128x128xbf16, #tpu.memory_space<vmem>>, vector<128x128xbf16>
    %cst_8 = arith.constant dense<0.000000e+00> : vector<8x128xf32>
    %11 = tpu.matmul %9, %10, %cst_8 {dimension_numbers = #tpu.dot_dimension_numbers<[1], [0], [0], [1], [0, 0, 1, 1], [], []>} : vector<8x128xbf16>, vector<128x128xbf16>, vector<8x128xf32> -> vector<8x128xf32>
    %c0_9 = arith.constant 0 : index
    %c0_10 = arith.constant 0 : index
    %12 = vector.load %arg5[%c0_9, %c0_10] : memref<1x128xf32, #tpu.memory_space<vmem>>, vector<1x128xf32>
    %13 = vector.broadcast %12 : vector<1x128xf32> to vector<8x128xf32>
    %14 = arith.addf %11, %13 : vector<8x128xf32>
    %15 = tpu.iota {dimensions = array<i32: 1>} : vector<8x128xi32>
    %c10_i32 = arith.constant 10 : i32
    %16 = vector.broadcast %c10_i32 : i32 to vector<8x128xi32>
    %17 = arith.cmpi slt, %15, %16 : vector<8x128xi32>
    %cst_11 = arith.constant -3.40282347E+38 : f32
    %18 = vector.broadcast %cst_11 : f32 to vector<8x128xf32>
    %19 = arith.select %17, %14, %18 : vector<8x128xi1>, vector<8x128xf32>
    %cst_12 = arith.constant dense<0xFF800000> : vector<8xf32>
    %20 = vector.multi_reduction <maximumf>, %19, %cst_12 [1] : vector<8x128xf32> to vector<8xf32>
    %21 = vector.shape_cast %20 : vector<8xf32> to vector<8x1xf32>
    %22 = vector.broadcast %21 : vector<8x1xf32> to vector<8x128xf32>
    %23 = arith.subf %19, %22 : vector<8x128xf32>
    %24 = math.exp %23 : vector<8x128xf32>
    %cst_13 = arith.constant dense<0.000000e+00> : vector<8xf32>
    %25 = vector.multi_reduction <add>, %24, %cst_13 [1] : vector<8x128xf32> to vector<8xf32>
    %26 = vector.shape_cast %25 : vector<8xf32> to vector<8x1xf32>
    %27 = math.log %26 : vector<8x1xf32>
    %28 = vector.broadcast %27 : vector<8x1xf32> to vector<8x128xf32>
    %29 = arith.subf %23, %28 : vector<8x128xf32>
    %c0_14 = arith.constant 0 : index
    %c0_15 = arith.constant 0 : index
    %30 = vector.load %arg6[%c0_14, %c0_15] : memref<8x128xf32, #tpu.memory_space<vmem>>, vector<8x128xf32>
    tpu.vector_store %arg6[%c0_14, %c0_15], %29 {strides = array<i32>} : memref<8x128xf32, #tpu.memory_space<vmem>>, vector<8x128xf32>,
    return
  }
  func.func @transform_0(%arg0: i32) -> (i32, i32) {
    %c0_i32 = arith.constant 0 : i32
    %c0_i32_0 = arith.constant 0 : i32
    return %arg0, %c0_i32 : i32, i32
  }
  func.func @transform_1(%arg0: i32) -> (i32, i32) {
    %c0_i32 = arith.constant 0 : i32
    %c0_i32_0 = arith.constant 0 : i32
    %c0_i32_1 = arith.constant 0 : i32
    return %c0_i32, %c0_i32_0 : i32, i32
  }
  func.func @transform_2(%arg0: i32) -> (i32, i32) {
    %c0_i32 = arith.constant 0 : i32
    %c0_i32_0 = arith.constant 0 : i32
    %c0_i32_1 = arith.constant 0 : i32
    return %c0_i32, %c0_i32_0 : i32, i32
  }
  func.func @transform_3(%arg0: i32) -> (i32, i32) {
    %c0_i32 = arith.constant 0 : i32
    %c0_i32_0 = arith.constant 0 : i32
    %c0_i32_1 = arith.constant 0 : i32
    return %c0_i32, %c0_i32_0 : i32, i32
  }
  func.func @transform_4(%arg0: i32) -> (i32, i32) {
    %c0_i32 = arith.constant 0 : i32
    %c0_i32_0 = arith.constant 0 : i32
    %c0_i32_1 = arith.constant 0 : i32
    return %c0_i32, %c0_i32_0 : i32, i32
  }
  func.func @transform_5(%arg0: i32) -> (i32, i32) {
    %c0_i32 = arith.constant 0 : i32
    %c0_i32_0 = arith.constant 0 : i32
    return %arg0, %c0_i32 : i32, i32
  }
}

</mosaic_0001>

<bundles_post_ra>
// kernel: tpu_custom_call.1
= control target key start
LH: loop header
LB: loop body
LE: loop exit
PB: predicated region body
PF: predicated region fallthrough
CT: control target
= control target key end

     0   :  { %10 = vsyncpa [#allocation3], 0  ;;  %s1219_s0 = inlined_call_operand.hbm [shape: f32[8,784], index: 0, kind: input, shape index: {}]   ;;  %s1220_s1 = inlined_call_operand.hbm [shape: bf16[784,128], index: 1, kind: input, shape index: {}]   ;;  %s1221_s2 = inlined_call_operand.vmem [shape: f32[1,128], index: 2, kind: input, shape index: {}]   ;;  %s1222_s3 = inlined_call_operand.hbm [shape: bf16[128,128], index: 3, kind: input, shape index: {}]   ;;  %s1223_s4 = inlined_call_operand.vmem [shape: f32[1,128], index: 4, kind: input, shape index: {}]   ;;  %s1224_s5 = inlined_call_operand.hbm [shape: f32[8,128], index: 5, kind: output, shape index: {}]  }
   0x1   :  { %11 = vsyncpa [#allocation6], 0 }
   0x2   :  { %12 = vsyncpa [#allocation4], 0  ;;  %s1108_s18 = smov [#allocation5]   ;;  %s1014_s22 = scalar_lea.hbm %s1220_s1, 6272 }
   0x3   :  { %s28_s19 = sshll.u32 %s1108_s18, 4  ;;  %p1015_p0 = scmp.ne.s32.totalorder %s1220_s1, %s1014_s22  ;;  %s29_s19 = int_to_ptr.vmem [resolvable:$true] %s28_s19 }
   0x4   :  { %p1018_p1 = scmp.lt.u32.totalorder %s1014_s22, %s1220_s1 }
   0x6   :  { %p1020_p2 = pnand %p1018_p1, %p1015_p0 }
   0x8   :  { %1023 = shalt.err (!%p1020_p2)
}
   0x9   :  { %s1024_s27 = scalar_lea.vmem %s29_s19, 6272  ;;  %p1029_p4 = scmp.lt.s32.totalorder %s29_s19, %s29_s19 }
   0xa   :  { %p1025_p3 = scmp.ne.s32.totalorder %s29_s19, %s1024_s27  ;;  %p1030_p5 = scmp.lt.s32.totalorder %s1024_s27, %s1024_s27 }
   0xc   :  { %p1031_p6 = por %p1030_p5, %p1029_p4 }
   0xe   :  { %p1032_p7 = pnand %p1031_p6, %p1025_p3 }
  0x10   :  { %1035 = shalt.err (!%p1032_p7)
}
  0x11   :  { %s1109_s28 = smov 64   ;;  %s1110_s29 = smov 4  }
  0x12   :  { %34 = dma.hbm_to_vmem [thread:$0]  %s1220_s1, 6272, %s29_s19, [#allocation6], %s1109_s28, %s1109_s28, %s1110_s29  }
  0x13   :  { %s1111_s7 = smov [#allocation2]   ;;  %s1112_s9 = smov [#allocation7]  }
  0x14   :  { %s19_s8 = sshll.u32 %s1111_s7, 4  ;;  %s42_s10 = sshll.u32 %s1112_s9, 4  ;;  %s20_s8 = int_to_ptr.vmem [resolvable:$true] %s19_s8  ;;  %s43_s10 = int_to_ptr.vmem [resolvable:$true] %s42_s10 }
  0x15   :  { %s1036_s13 = scalar_lea.hbm %s1219_s0, 896 }
  0x16   :  { %p1037_p8 = scmp.ne.s32.totalorder %s1219_s0, %s1036_s13  ;;  %p1040_p9 = scmp.lt.u32.totalorder %s1036_s13, %s1219_s0 }
  0x18   :  { %p1042_p10 = pnand %p1040_p9, %p1037_p8 }
  0x1a   :  { %1045 = shalt.err (!%p1042_p10)
}
  0x1b   :  { %s1046_s1 = scalar_lea.vmem %s20_s8, 896  ;;  %p1051_p12 = scmp.lt.s32.totalorder %s20_s8, %s20_s8 }
  0x1c   :  { %p1047_p11 = scmp.ne.s32.totalorder %s20_s8, %s1046_s1  ;;  %p1052_p13 = scmp.lt.s32.totalorder %s1046_s1, %s1046_s1 }
  0x1e   :  { %p1053_p0 = por %p1052_p13, %p1051_p12 }
  0x20   :  { %p1054_p1 = pnand %p1053_p0, %p1047_p11 }
  0x22   :  { %1057 = shalt.err (!%p1054_p1)
}
  0x23   :  { %22 = dma.hbm_to_vmem [thread:$0]  %s1219_s0, 896, %s20_s8, [#allocation3]  }
  0x24   :  { %s1058_s22 = scalar_lea.hbm %s1222_s3, 1024 }
  0x25   :  { %p1059_p2 = scmp.ne.s32.totalorder %s1222_s3, %s1058_s22  ;;  %p1062_p3 = scmp.lt.u32.totalorder %s1058_s22, %s1222_s3 }
  0x27   :  { %p1064_p4 = pnand %p1062_p3, %p1059_p2 }
  0x29   :  { %1067 = shalt.err (!%p1064_p4)
}
  0x2a   :  { %s1068_s27 = scalar_lea.vmem %s43_s10, 1024  ;;  %p1073_p6 = scmp.lt.s32.totalorder %s43_s10, %s43_s10 }
  0x2b   :  { %p1069_p5 = scmp.ne.s32.totalorder %s43_s10, %s1068_s27  ;;  %p1074_p7 = scmp.lt.s32.totalorder %s1068_s27, %s1068_s27 }
  0x2d   :  { %p1075_p8 = por %p1074_p7, %p1073_p6 }
  0x2f   :  { %p1076_p9 = pnand %p1075_p8, %p1069_p5 }
  0x31   :  { %1079 = shalt.err (!%p1076_p9)
}
  0x32   :  { %48 = dma.hbm_to_vmem [thread:$0]  %s1222_s3, 1024, %s43_s10, [#allocation6], %s1109_s28, %s1109_s28, %s1110_s29  }
  0x33   :  { %1102 = dma.done.wait [#allocation3], 896  }
  0x34   :  { %1103 = vsyncadd [#allocation3], 4294966400 }
  0x35   :  { %1104 = dma.done.wait [#allocation6], 7296  }
  0x36   :  { %1105 = vsyncadd [#allocation6], 4294960000  ;;  %v953_v0 = vld [vmem:[#allocation5 + $0x40] sm:$0xff]   ;;  %v957_v4 = vld [vmem:[#allocation5 + $0x48] sm:$0xff]   ;;  %v1113_v44 = vmov 0.0   ;;  %vm1114_vm0 = vmmov 0  }
  0x37   :  { %v954_v1 = vld [vmem:[#allocation5] sm:$0xff]   ;;  %842 = vmatprep.subr.bf16.mxu0 %v953_v0  ;;  %v958_v5 = vld [vmem:[#allocation5 + $0x8] sm:$0xff]   ;;  %v961_v8 = vld [vmem:[#allocation5 + $0x50] sm:$0xff]   ;;  %vm474_vm1 = vcmask 130048   ;;  %s1115_s6 = smov [#allocation8]  }
  0x38   :  { %v955_v2 = vld [vmem:[#allocation5 + $0xc0] sm:$0xff]   ;;  %843 = vmatpush3.bf16.msra.mxu0 %v954_v1  ;;  %v959_v6 = vld [vmem:[#allocation5 + $0xc8] sm:$0xff]   ;;  %v962_v9 = vld [vmem:[#allocation5 + $0x10] sm:$0xff]   ;;  %s772_s7 = sshll.u32 %s1115_s6, 4  ;;  %s773_s7 = int_to_ptr.vmem [resolvable:$true] %s772_s7 }
  0x39   :  { %v956_v3 = vld [vmem:[#allocation5 + $0x80] sm:$0xff]   ;;  %864 = vmatprep.subr.bf16.mxu1 %v955_v2  ;;  %844 = vmatprep.subr.bf16.mxu0 %v957_v4  ;;  %v960_v7 = vld [vmem:[#allocation5 + $0x88] sm:$0xff]   ;;  %v963_v10 = vld [vmem:[#allocation5 + $0xd0] sm:$0xff]   ;;  %p1085_p11 = scmp.lt.s32.totalorder %s773_s7, %s773_s7 }
  0x3a   :  { %865 = vmatpush3.bf16.msra.mxu1 %v956_v3  ;;  %v964_v11 = vld [vmem:[#allocation5 + $0x90] sm:$0xff]   ;;  %v965_v12 = vld [vmem:[#allocation5 + $0x58] sm:$0xff]   ;;  %v969_v16 = vld [vmem:[#allocation5 + $0x60] sm:$0xff]  }
  0x3b   :  { %866 = vmatprep.subr.bf16.mxu1 %v959_v6  ;;  %v966_v13 = vld [vmem:[#allocation5 + $0x18] sm:$0xff]   ;;  %v970_v17 = vld [vmem:[#allocation5 + $0x20] sm:$0xff]   ;;  %v973_v20 = vld [vmem:[#allocation5 + $0x68] sm:$0xff]  }
  0x3c   :  { %845 = vmatpush3.bf16.msra.mxu0 %v958_v5  ;;  %v967_v14 = vld [vmem:[#allocation5 + $0xd8] sm:$0xff]   ;;  %v971_v18 = vld [vmem:[#allocation5 + $0xe0] sm:$0xff]   ;;  %v974_v21 = vld [vmem:[#allocation5 + $0x28] sm:$0xff]  }
  0x3d   :  { %846 = vmatprep.subr.bf16.mxu0 %v961_v8  ;;  %v968_v15 = vld [vmem:[#allocation5 + $0x98] sm:$0xff]   ;;  %v972_v19 = vld [vmem:[#allocation5 + $0xa0] sm:$0xff]   ;;  %v975_v22 = vld [vmem:[#allocation5 + $0xe8] sm:$0xff]  }
  0x3e   :  { %867 = vmatpush3.bf16.msra.mxu1 %v960_v7  ;;  %v976_v23 = vld [vmem:[#allocation5 + $0xa8] sm:$0xff]   ;;  %v977_v24 = vld [vmem:[#allocation5 + $0x70] sm:$0xff]   ;;  %v981_v28 = vld [vmem:[#allocation5 + $0x78] sm:$0xff]  }
  0x3f   :  { %868 = vmatprep.subr.bf16.mxu1 %v963_v10  ;;  %v978_v25 = vld [vmem:[#allocation5 + $0x30] sm:$0xff]   ;;  %v982_v29 = vld [vmem:[#allocation5 + $0x38] sm:$0xff]   ;;  %v61_v34 = vld [vmem:[#allocation2] sm:$0xff] }
  0x40   :  { %847 = vmatpush3.bf16.msra.mxu0 %v962_v9  ;;  %v979_v26 = vld [vmem:[#allocation5 + $0xf0] sm:$0xff]   ;;  %v983_v30 = vld [vmem:[#allocation5 + $0xf8] sm:$0xff]   ;;  %v68_v35 = vpack.c.bf16 %v61_v34, %v61_v34  ;;  %v985_v36 = vld [vmem:[#allocation5 + $0x140] sm:$0xff]   ;;  %v751_v34 = vlaneseq }
  0x41   :  { %848 = vmatprep.subr.bf16.mxu0 %v965_v12  ;;  %v980_v27 = vld [vmem:[#allocation5 + $0xb0] sm:$0xff]   ;;  %v984_v33 = vld [vmem:[#allocation5 + $0xb8] sm:$0xff]   ;;  %v64_v37 = vld [vmem:[#allocation2 + $0x18] sm:$0xff] }
  0x42   :  { %869 = vmatpush3.bf16.msra.mxu1 %v964_v11  ;;  %v62_v31 = vld [vmem:[#allocation2 + $0x8] sm:$0xff]  ;;  %v71_v38 = vpack.c.bf16 %v64_v37, %v64_v37  ;;  %v986_v39 = vld [vmem:[#allocation5 + $0x100] sm:$0xff]   ;;  %v63_v40 = vld [vmem:[#allocation2 + $0x10] sm:$0xff] }
  0x43   :  { %870 = vmatprep.subr.bf16.mxu1 %v967_v14  ;;  %v69_v32 = vpack.c.bf16 %v62_v31, %v62_v31  ;;  %v70_v41 = vpack.c.bf16 %v63_v40, %v63_v40  ;;  %v987_v42 = vld [vmem:[#allocation5 + $0x148] sm:$0xff]   ;;  %v989_v45 = vld [vmem:[#allocation5 + $0x150] sm:$0xff]   ;;  %v991_v47 = vld [vmem:[#allocation5 + $0x158] sm:$0xff]  }
  0x44   :  { %849 = vmatpush3.bf16.msra.mxu0 %v966_v13  ;;  %550 = vmatprep.mubr.bf16.mxu1 %v71_v38  ;;  %v988_v43 = vld [vmem:[#allocation5 + $0x108] sm:$0xff]   ;;  %v990_v46 = vld [vmem:[#allocation5 + $0x110] sm:$0xff]   ;;  %v992_v48 = vld [vmem:[#allocation5 + $0x118] sm:$0xff]  }
  0x45   :  { %850 = vmatprep.subr.bf16.mxu0 %v969_v16  ;;  %510 = vmatprep.mubr.bf16.mxu0 %v69_v32  ;;  %v993_v49 = vld [vmem:[#allocation5 + $0x160] sm:$0xff]   ;;  %v995_v51 = vld [vmem:[#allocation5 + $0x168] sm:$0xff]   ;;  %v66_v54 = vld [vmem:[#allocation2 + $0x28] sm:$0xff] }
  0x46   :  { %871 = vmatpush3.bf16.msra.mxu1 %v968_v15  ;;  %v994_v50 = vld [vmem:[#allocation5 + $0x120] sm:$0xff]   ;;  %v996_v52 = vld [vmem:[#allocation5 + $0x128] sm:$0xff]   ;;  %v997_v55 = vld [vmem:[#allocation5 + $0x170] sm:$0xff]   ;;  %v73_v56 = vpack.c.bf16 %v66_v54, %v66_v54 }
  0x47   :  { %872 = vmatprep.subr.bf16.mxu1 %v971_v18  ;;  %v1001_v53 = vld [vmem:[#allocation5 + $0x180] sm:$0xff]   ;;  %v67_v57 = vld [vmem:[#allocation2 + $0x30] sm:$0xff]  ;;  %v998_v59 = vld [vmem:[#allocation5 + $0x130] sm:$0xff]  }
  0x48   :  { %851 = vmatpush3.bf16.msra.mxu0 %v970_v17  ;;  %v74_v58 = vpack.c.bf16 %v67_v57, %v67_v57  ;;  %v999_v60 = vld [vmem:[#allocation5 + $0x178] sm:$0xff]   ;;  %v65_v62 = vld [vmem:[#allocation2 + $0x20] sm:$0xff]  ;;  %v1003_v1 = vld [vmem:[#allocation7 + $0x8] sm:$0xff]  }
  0x49   :  { %852 = vmatprep.subr.bf16.mxu0 %v973_v20  ;;  %v1000_v61 = vld [vmem:[#allocation5 + $0x138] sm:$0xff]   ;;  %v72_v63 = vpack.c.bf16 %v65_v62, %v65_v62  ;;  %v1002_v0 = vld [vmem:[#allocation7] sm:$0xff]   ;;  %v1005_v3 = vld [vmem:[#allocation7 + $0x18] sm:$0xff]  }
  0x4a   :  { %873 = vmatpush3.bf16.msra.mxu1 %v972_v19  ;;  %v1004_v2 = vld [vmem:[#allocation7 + $0x10] sm:$0xff]   ;;  %v1006_v4 = vld [vmem:[#allocation7 + $0x20] sm:$0xff]   ;;  %v1007_v5 = vld [vmem:[#allocation7 + $0x28] sm:$0xff]  }
  0x4b   :  { %874 = vmatprep.subr.bf16.mxu1 %v975_v22  ;;  %v1008_v6 = vld [vmem:[#allocation7 + $0x30] sm:$0xff]   ;;  %v1009_v7 = vld [vmem:[#allocation7 + $0x38] sm:$0xff]   ;;  %v782_v9 = vld [vmem:[%s1221_s2] ss:$0 sm:$0xff] }
  0x4c   :  { %853 = vmatpush3.bf16.msra.mxu0 %v974_v21 }
  0x4d   :  { %854 = vmatprep.subr.bf16.mxu0 %v977_v24 }
  0x4e   :  { %875 = vmatpush3.bf16.msra.mxu1 %v976_v23 }
  0x4f   :  { %876 = vmatprep.subr.bf16.mxu1 %v979_v26 }
  0x50   :  { %855 = vmatpush3.bf16.msra.mxu0 %v978_v25 }
  0x51   :  { %856 = vmatprep.subr.bf16.mxu0 %v981_v28 }
  0x52   :  { %877 = vmatpush3.bf16.msra.mxu1 %v980_v27 }
  0x53   :  { %878 = vmatprep.subr.bf16.mxu1 %v983_v30 }
  0x54   :  { %857 = vmatpush3.bf16.msra.mxu0 %v982_v29 }
  0x55   :  { %886 = vmatprep.subr.bf16.mxu0 %v985_v36  ;;  %v833_v36 = vld [vmem:[%s1223_s4] ss:$0 sm:$0xff]  ;;  %s1080_s4 = scalar_lea.vmem %s773_s7, 128 }
  0x56   :  { %879 = vmatpush3.bf16.msra.mxu1 %v984_v33  ;;  %p1081_p10 = scmp.ne.s32.totalorder %s773_s7, %s1080_s4  ;;  %p1086_p12 = scmp.lt.s32.totalorder %s1080_s4, %s1080_s4 }
  0x57   :  { %511 = vmatmul.mubr.bf16.vlgmr.msra.gmra.mrb[0].mxu0 %v68_v35  ;;  %919 = vmatprep.subr.bf16.mxu1 %v1113_v44  ;;  %v752_v35 = vand.u32 127, %v751_v34 }
  0x58   :  { %887 = vmatpush3.bf16.msra.mxu0 %v986_v39  ;;  %590 = vmatprep.mubr.bf16.mxu0 %v73_v56  ;;  %p1087_p13 = por %p1086_p12, %p1085_p11 }
  0x59   :  { %551 = vmatmul.mubr.bf16.vlgmr.msra.gmra.mrb[0].mxu1 %v70_v41  ;;  %888 = vmatprep.subr.bf16.mxu0 %v987_v42  ;;  %vm753_vm2 = vcmp.lt.s32.totalorder %v752_v35, 10 }
  0x5a   :  { %921 = vmatprep.mubr.msk.bf16.mxu1 %vm1114_vm0, %v1113_v44  ;;  %920 = vmatpush3.bf16.msra.mxu1 %v1001_v53  ;;  %p1088_p0 = pnand %p1087_p13, %p1081_p10 }
  0x5b   :  { %925 = vmatprep.subr.bf16.mxu1 %v1113_v44 }
  0x5c   :  { %889 = vmatpush3.bf16.msra.mxu0 %v988_v43 }
  0x5d   :  { %890 = vmatprep.subr.bf16.mxu0 %v989_v45 }
  0x60   :  { %891 = vmatpush3.bf16.msra.mxu0 %v990_v46 }
  0x61   :  { %892 = vmatprep.subr.bf16.mxu0 %v991_v47  ;;  %922 = vmatmul.mubr.msk.bf16.vlgmr.msra.gmra.mrb[4].mxu1 %vm474_vm1, %v74_v58 }
  0x62   :  { %941 = vmatprep.mubr.msk.bf16.mxu1 %vm1114_vm0, %v1113_v44  ;;  %926 = vmatpush3.bf16.msra.mxu1 %v1002_v0 }
  0x63   :  { %927 = vmatprep.subr.bf16.mxu1 %v1113_v44 }
  0x64   :  { %893 = vmatpush3.bf16.msra.mxu0 %v992_v48 }
  0x65   :  { %894 = vmatprep.subr.bf16.mxu0 %v993_v49 }
  0x66   :  { %928 = vmatpush3.bf16.msra.mxu1 %v1003_v1 }
  0x67   :  { %929 = vmatprep.subr.bf16.mxu1 %v1113_v44 }
  0x68   :  { %895 = vmatpush3.bf16.msra.mxu0 %v994_v50 }
  0x69   :  { %896 = vmatprep.subr.bf16.mxu0 %v995_v51 }
  0x6a   :  { %930 = vmatpush3.bf16.msra.mxu1 %v1004_v2 }
  0x6b   :  { %931 = vmatprep.subr.bf16.mxu1 %v1113_v44 }
  0x6c   :  { %897 = vmatpush3.bf16.msra.mxu0 %v996_v52 }
  0x6d   :  { %898 = vmatprep.subr.bf16.mxu0 %v997_v55 }
  0x6e   :  { %932 = vmatpush3.bf16.msra.mxu1 %v1005_v3 }
  0x6f   :  { %933 = vmatprep.subr.bf16.mxu1 %v1113_v44 }
  0x70   :  { %899 = vmatpush3.bf16.msra.mxu0 %v998_v59 }
  0x71   :  { %900 = vmatprep.subr.bf16.mxu0 %v999_v60 }
  0x72   :  { %934 = vmatpush3.bf16.msra.mxu1 %v1006_v4 }
  0x73   :  { %935 = vmatprep.subr.bf16.mxu1 %v1113_v44 }
  0x74   :  { %901 = vmatpush3.bf16.msra.mxu0 %v1000_v61 }
  0x76   :  { %936 = vmatpush3.bf16.msra.mxu1 %v1007_v5 }
  0x77   :  { %591 = vmatmul.mubr.bf16.vlgmr.msra.gmra.mrb[4].mxu0 %v72_v63  ;;  %937 = vmatprep.subr.bf16.mxu1 %v1113_v44 }
  0x7a   :  { %938 = vmatpush3.bf16.msra.mxu1 %v1008_v6 }
  0x7b   :  { %939 = vmatprep.subr.bf16.mxu1 %v1113_v44 }
  0x7e   :  { %940 = vmatpush3.bf16.msra.mxu1 %v1009_v7 }
 0x12a   :  { %v858_v8 = vpop.f32.mrb[0].mxu0 }
 0x12b   :  { %v859_v10 = vpop.f32.mrb[1].mxu0 }
 0x12c   :  { %v860_v11 = vadd.f32 %v859_v10, %v858_v8  ;;  %v861_v12 = vpop.f32.mrb[2].mxu0  ;;  %v880_v13 = vpop.f32.mrb[0].mxu1 }
 0x12d   :  { %v862_v14 = vpop.f32.mrb[3].mxu0  ;;  %v881_v16 = vpop.f32.mrb[1].mxu1 }
 0x12e   :  { %v513_v15 = vadd.f32 %v860_v11, %v782_v9  ;;  %v882_v17 = vadd.f32 %v881_v16, %v880_v13  ;;  %v883_v18 = vpop.f32.mrb[2].mxu1 }
 0x12f   :  { %v884_v19 = vpop.f32.mrb[3].mxu1 }
 0x130   :  { %v553_v20 = vadd.f32 %v882_v17, %v513_v15 }
 0x134   :  { %v632_v21 = vpop.f32.mrb[4].mxu1 }
 0x135   :  { %v923_v22 = vpop.f32.mrb[5].mxu1 }
 0x136   :  { %v635_v23 = vpop.f32.mrb[6].mxu1 }
 0x137   :  { %v924_v24 = vpop.f32.mrb[7].mxu1 }
 0x14a   :  { %v902_v25 = vpop.f32.mrb[4].mxu0 }
 0x14b   :  { %v903_v26 = vpop.f32.mrb[5].mxu0 }
 0x14c   :  { %v904_v27 = vadd.f32 %v903_v26, %v902_v25  ;;  %v905_v28 = vpop.f32.mrb[6].mxu0 }
 0x14d   :  { %v906_v29 = vpop.f32.mrb[7].mxu0 }
 0x14e   :  { %v593_v30 = vadd.f32 %v904_v27, %v553_v20 }
 0x150   :  { %v633_v31 = vadd.f32 %v632_v21, %v593_v30 }
 0x152   :  { %v638_v32 = vmax.f32 %v633_v31, 0.0 }
 0x154   :  { %v639_v33 = vpack.c.bf16 %v638_v32, %v638_v32 }
 0x156   :  { %942 = vmatmul.mubr.bf16.vlgmr.msra.gmra.mrb[8].mxu1 %v639_v33 }
 0x229   :  { %v745_v37 = vpop.f32.mrb[8].mxu1 }
 0x22a   :  { %v746_v38 = vadd.f32 %v833_v36, %v745_v37  ;;  %v943_v39 = vpop.f32.mrb[9].mxu1 }
 0x22b   :  { %v748_v40 = vpop.f32.mrb[10].mxu1 }
 0x22c   :  { %v944_v41 = vpop.f32.mrb[11].mxu1  ;;  %v754_v42 = vsel %vm753_vm2, %v746_v38, -3.4028235e+38 }
 0x22d   :  { %755 = vmax.xlane.f32.xlu0 %v754_v42 }
 0x2ba   :  { %v756_v43 = vpop.xlane.xlu0 %755 }
 0x2bb   :  { %v757_v44 = vsub.f32 %v754_v42, %v756_v43 }
 0x2bd   :  { %v758_v45 = vmul.f32 1.442695, %v757_v44 }
 0x2bf   :  { %1010 = vpow2.f32 %v758_v45 }
 0x2c9   :  { %v1011_v46 = vpop.eup %1010 }
 0x2ca   :  { %760 = vadd.xlane.f32.xlu0 %v1011_v46 }
 0x357   :  { %v761_v47 = vpop.xlane.xlu0 %760 }
 0x358   :  { %1012 = vlog2.f32 %v761_v47 }
 0x362   :  { %v1013_v48 = vpop.eup %1012 }
 0x363   :  { %v763_v49 = vmul.f32 0.6931472, %v1013_v48 }
 0x365   :  { %v764_v50 = vsub.f32 %v757_v44, %v763_v49 }
 0x367   :  { %765 = vst [vmem:[#allocation8] sm:$0xff] %v764_v50 }
 0x368   :  { %1091 = shalt.err (!%p1088_p0)
}
 0x369   :  { %s1092_s10 = scalar_lea.hbm %s1224_s5, 128 }
 0x36a   :  { %p1093_p1 = scmp.ne.s32.totalorder %s1224_s5, %s1092_s10  ;;  %p1096_p2 = scmp.lt.u32.totalorder %s1092_s10, %s1224_s5 }
 0x36c   :  { %p1098_p3 = pnand %p1096_p2, %p1093_p1 }
 0x36e   :  { %1101 = shalt.err (!%p1098_p3)
}
 0x36f   :  { %775 = dma.vmem_to_hbm [thread:$0]  %s773_s7, 128, %s1224_s5, [#allocation4]  }
 0x370   :  { %1106 = dma.done.wait [#allocation4], 128  }
 0x371   :  { %1107 = vsyncadd [#allocation4], 4294967168 }
 0x372   :  { %779 = vsyncpa [#allocation3], 1 }
 0x373   :  { %780 = vsyncpa [#allocation6], 1 }
 0x374   :  { %781 = vsyncpa [#allocation4], 1 }

</bundles_post_ra>
